<compile_context>
chip_gen: v7x
topology: tpu7x:2x2x1
jax: 0.10.0
libtpu: 0.0.40
codegen_flags: <defaults>
</compile_context>

<pallas_src>
import jax
import jax.numpy as jnp
from jax import lax
from jax.experimental import pallas as pl
from jax.experimental.pallas import tpu as pltpu


def actor_kernel(x_ref, w1_ref, b1_ref, w2t_ref, b2t_ref, ot_ref):
    """One batch tile, fully in VMEM.

    x_ref:   (tb, S)  f32   batch tile (pipelined over the grid)
    w1_ref:  (S, D)   f32   resident
    b1_ref:  (1, D)   f32   resident
    w2t_ref: (A, D)   f32   resident (second Linear weight, PyTorch (out,in) layout)
    b2t_ref: (A, 1)   f32   resident
    ot_ref:  (A, tb)  f32   transposed output tile (lane-dense stores)
    """
    x = x_ref[...]                                                       # (tb, S)
    # Layer 1: MXU matmul, f32 accumulation; bias + ReLU on the VPU.
    h = jnp.dot(x, w1_ref[...], preferred_element_type=jnp.float32)     # (tb, D)
    h = jnp.maximum(h + b1_ref[...], 0.0)
    # Layer 2 computed directly in transposed orientation:
    #   y^T[a, m] = sum_d w2t[a, d] * h[m, d]   (contract last dims of both operands)
    y_t = lax.dot_general(w2t_ref[...], h,
                          dimension_numbers=(((1,), (1,)), ((), ())),
                          preferred_element_type=jnp.float32)           # (A, tb)
    # Bias + tanh (EUP) then a lane-dense store of the (A, tb) tile.
    ot_ref[...] = jnp.tanh(y_t + b2t_ref[...])


def _choose_batch_tile(B, block_b):
    """Large tiles to amortize per-step overhead; 128-aligned when tiling."""
    if B <= block_b:
        return B                      # one fat step; block dims == full array dims
    n_steps = pl.cdiv(B, block_b)
    tb = ((pl.cdiv(B, n_steps) + 127) // 128) * 128   # balanced, lane/sublane aligned
    return B if tb >= B else tb


def actor_forward_t(x, w1, b1, w2t, b2t, *, block_b=2048):
    """Fused Actor forward. Returns the TRANSPOSED output (A, B), lane-dense.

    x: (B, S) f32; w1: (S, D); b1: (1, D); w2t: (A, D); b2t: (A, 1).
    """
    B, S = x.shape
    D = w1.shape[1]
    A = w2t.shape[0]

    tb = _choose_batch_tile(B, block_b)
    grid = (pl.cdiv(B, tb),)

    return pl.pallas_call(
        actor_kernel,
        out_shape=jax.ShapeDtypeStruct((A, B), jnp.float32),
        grid=grid,
        in_specs=[
            pl.BlockSpec((tb, S), lambda i: (i, 0)),   # x: tiled over batch rows
            pl.BlockSpec((S, D), lambda i: (0, 0)),    # w1: resident across steps
            pl.BlockSpec((1, D), lambda i: (0, 0)),    # b1: resident
            pl.BlockSpec((A, D), lambda i: (0, 0)),    # w2t: resident
            pl.BlockSpec((A, 1), lambda i: (0, 0)),    # b2t: resident
        ],
        out_specs=pl.BlockSpec((A, tb), lambda i: (0, i)),  # lane-dense (A, tb) tiles
        compiler_params=pltpu.CompilerParams(
            # Independent batch steps -> megacore sharding on v7x; harmless elsewhere.
            dimension_semantics=("parallel",)),
    )(x, w1, b1, w2t, b2t)


def actor_forward(x, w1, b1, w2t, b2t, *, block_b=2048):
    """Module-layout output (B, A) = tanh(relu(x @ w1 + b1) @ w2t.T + b2t.T).

    The final transpose is cheap layout plumbing on the thin output; use
    actor_forward_t directly if an (A, B) layout is acceptable downstream.
    """
    return actor_forward_t(x, w1, b1, w2t, b2t, block_b=block_b).T


if __name__ == "__main__":
    # Module dims: state_size=16, d_model=32, action_size=8.
    state_size, d_model, action_size = 16, 32, 8

    key = jax.random.PRNGKey(0)
    kw1, kb1, kw2, kb2, kx = jax.random.split(key, 5)

    # Deterministic synthetic parameters, stored once in kernel layouts.
    w1 = jax.random.normal(kw1, (state_size, d_model), dtype=jnp.float32) * 0.1   # = W1.T
    b1 = jax.random.normal(kb1, (1, d_model), dtype=jnp.float32) * 0.1
    w2t = jax.random.normal(kw2, (action_size, d_model), dtype=jnp.float32) * 0.1  # = W2 (out,in)
    b2t = jax.random.normal(kb2, (action_size, 1), dtype=jnp.float32) * 0.1

    def reference(x):
        h = jnp.maximum(x @ w1 + b1, 0.0)
        return jnp.tanh(h @ w2t.T + b2t.T)

    # Exercise: aligned multi-tile, multi-tile with partial tail, tiny batch,
    # and a single fat tile (default block_b).
    cases = ((256, 128), (200, 128), (2, 2048), (512, 2048))
    for batch, bb in cases:
        kx, sub = jax.random.split(kx)
        x = jax.random.normal(sub, (batch, state_size), dtype=jnp.float32)

        out = jax.block_until_ready(actor_forward(x, w1, b1, w2t, b2t, block_b=bb))
        assert out.shape == (batch, action_size)

        ref = reference(x)
        # All-f32 path; loose-ish tolerance only covers MXU f32 decomposition / EUP tanh.
        assert jnp.allclose(out, ref, atol=2e-2, rtol=2e-2), (
            f"mismatch at batch={batch}, block_b={bb}")

    print("KERNEL_OK")
</pallas_src>

<mosaic_0001>
module attributes {stable_mosaic.version = 11 : i64} {
  func.func @actor_kernel(%arg0: i32, %arg1: memref<128x16xf32, #tpu.memory_space<vmem>>, %arg2: memref<16x32xf32, #tpu.memory_space<vmem>>, %arg3: memref<1x32xf32, #tpu.memory_space<vmem>>, %arg4: memref<8x32xf32, #tpu.memory_space<vmem>>, %arg5: memref<8x1xf32, #tpu.memory_space<vmem>>, %arg6: memref<8x128xf32, #tpu.memory_space<vmem>>) attributes {dimension_semantics = [#tpu.dimension_semantics<parallel>], iteration_bounds = array<i64: 2>, scalar_prefetch = 0 : i64, scratch_operands = 0 : i64, tpu.core_type = #tpu.core_type<tc>, window_params = [{transform_indices = @transform_0, window_bounds = array<i64: 128, 16>}, {pipeline_mode = #tpu.pipeline_mode<synchronous>, transform_indices = @transform_1, window_bounds = array<i64: 16, 32>}, {pipeline_mode = #tpu.pipeline_mode<synchronous>, transform_indices = @transform_2, window_bounds = array<i64: 1, 32>}, {pipeline_mode = #tpu.pipeline_mode<synchronous>, transform_indices = @transform_3, window_bounds = array<i64: 8, 32>}, {pipeline_mode = #tpu.pipeline_mode<synchronous>, transform_indices = @transform_4, window_bounds = array<i64: 8, 1>}, {transform_indices = @transform_5, window_bounds = array<i64: 8, 128>}]} {
    %c0 = arith.constant 0 : index
    %c0_0 = arith.constant 0 : index
    %0 = vector.load %arg1[%c0, %c0_0] : memref<128x16xf32, #tpu.memory_space<vmem>>, vector<128x16xf32>
    %c0_1 = arith.constant 0 : index
    %c0_2 = arith.constant 0 : index
    %1 = vector.load %arg2[%c0_1, %c0_2] : memref<16x32xf32, #tpu.memory_space<vmem>>, vector<16x32xf32>
    %cst = arith.constant dense<0.000000e+00> : vector<128x32xf32>
    %2 = tpu.matmul %0, %1, %cst {dimension_numbers = #tpu.dot_dimension_numbers<[1], [0], [0], [1], [0, 0, 1, 1], [], []>} : vector<128x16xf32>, vector<16x32xf32>, vector<128x32xf32> -> vector<128x32xf32>
    %c0_3 = arith.constant 0 : index
    %c0_4 = arith.constant 0 : index
    %3 = vector.load %arg3[%c0_3, %c0_4] : memref<1x32xf32, #tpu.memory_space<vmem>>, vector<1x32xf32>
    %4 = vector.broadcast %3 : vector<1x32xf32> to vector<128x32xf32>
    %5 = arith.addf %2, %4 : vector<128x32xf32>
    %cst_5 = arith.constant 0.000000e+00 : f32
    %6 = vector.broadcast %cst_5 : f32 to vector<128x32xf32>
    %7 = arith.maximumf %5, %6 : vector<128x32xf32>
    %c0_6 = arith.constant 0 : index
    %c0_7 = arith.constant 0 : index
    %8 = vector.load %arg4[%c0_6, %c0_7] : memref<8x32xf32, #tpu.memory_space<vmem>>, vector<8x32xf32>
    %cst_8 = arith.constant dense<0.000000e+00> : vector<8x128xf32>
    %9 = tpu.matmul %8, %7, %cst_8 {dimension_numbers = #tpu.dot_dimension_numbers<[1], [1], [0], [0], [0, 0, 1, 0], [], []>} : vector<8x32xf32>, vector<128x32xf32>, vector<8x128xf32> -> vector<8x128xf32>
    %c0_9 = arith.constant 0 : index
    %c0_10 = arith.constant 0 : index
    %10 = vector.load %arg5[%c0_9, %c0_10] : memref<8x1xf32, #tpu.memory_space<vmem>>, vector<8x1xf32>
    %11 = vector.broadcast %10 : vector<8x1xf32> to vector<8x128xf32>
    %12 = arith.addf %9, %11 : vector<8x128xf32>
    %13 = math.tanh %12 : vector<8x128xf32>
    %c0_11 = arith.constant 0 : index
    %c0_12 = arith.constant 0 : index
    %14 = vector.load %arg6[%c0_11, %c0_12] : memref<8x128xf32, #tpu.memory_space<vmem>>, vector<8x128xf32>
    tpu.vector_store %arg6[%c0_11, %c0_12], %13 {strides = array<i32>} : memref<8x128xf32, #tpu.memory_space<vmem>>, vector<8x128xf32>,
    return
  }
  func.func @transform_0(%arg0: i32) -> (i32, i32) {
    %c0_i32 = arith.constant 0 : i32
    %c0_i32_0 = arith.constant 0 : i32
    return %arg0, %c0_i32 : i32, i32
  }
  func.func @transform_1(%arg0: i32) -> (i32, i32) {
    %c0_i32 = arith.constant 0 : i32
    %c0_i32_0 = arith.constant 0 : i32
    %c0_i32_1 = arith.constant 0 : i32
    return %c0_i32, %c0_i32_0 : i32, i32
  }
  func.func @transform_2(%arg0: i32) -> (i32, i32) {
    %c0_i32 = arith.constant 0 : i32
    %c0_i32_0 = arith.constant 0 : i32
    %c0_i32_1 = arith.constant 0 : i32
    return %c0_i32, %c0_i32_0 : i32, i32
  }
  func.func @transform_3(%arg0: i32) -> (i32, i32) {
    %c0_i32 = arith.constant 0 : i32
    %c0_i32_0 = arith.constant 0 : i32
    %c0_i32_1 = arith.constant 0 : i32
    return %c0_i32, %c0_i32_0 : i32, i32
  }
  func.func @transform_4(%arg0: i32) -> (i32, i32) {
    %c0_i32 = arith.constant 0 : i32
    %c0_i32_0 = arith.constant 0 : i32
    %c0_i32_1 = arith.constant 0 : i32
    return %c0_i32, %c0_i32_0 : i32, i32
  }
  func.func @transform_5(%arg0: i32) -> (i32, i32) {
    %c0_i32 = arith.constant 0 : i32
    %c0_i32_0 = arith.constant 0 : i32
    return %c0_i32, %arg0 : i32, i32
  }
}

</mosaic_0001>

<bundles_post_ra>
// kernel: tpu_custom_call.1
= control target key start
LH: loop header
LB: loop body
LE: loop exit
PB: predicated region body
PF: predicated region fallthrough
CT: control target
= control target key end

     0   :  { %10 = vsyncpa [#allocation3], 0  ;;  %s1167_s0 = inlined_call_operand.vmem [shape: f32[256,16], index: 0, kind: input, shape index: {}]   ;;  %s1168_s1 = inlined_call_operand.vmem [shape: f32[16,32], index: 1, kind: input, shape index: {}]   ;;  %s1169_s2 = inlined_call_operand.vmem [shape: f32[1,32], index: 2, kind: input, shape index: {}]   ;;  %s1170_s3 = inlined_call_operand.vmem [shape: f32[8,32], index: 3, kind: input, shape index: {}]   ;;  %s1171_s4 = inlined_call_operand.vmem [shape: f32[8,1], index: 4, kind: input, shape index: {}]   ;;  %s1172_s5 = inlined_call_operand.hbm [shape: f32[8,256], index: 5, kind: output, shape index: {}]  }
   0x1   :  { %12 = vsyncpa [#allocation3 + $0x1], 0  ;;  %s988_s18 = smov 0   ;;  %s990_s19 = smov 0  }
   0x2   :  { %s992_s20 = smov 0   ;;  %s994_s21 = smov 0  }
   0x3 LB: > { %s1009_s22 = sadd.s32 4294967295, %s951_s21   ;;  %s664_s23 = sadd.s32 4294967294, %s951_s21   ;;  %s951_s21 = sphi %s994_s21, %s1180_s21   ;;  %s947_s20 = sphi %s992_s20, %s1179_s20   ;;  %s943_s19 = sphi %s990_s19, %s1178_s19   ;;  %s939_s18 = sphi %s988_s18, %s1177_s18  }
   0x4   : > { %s1013_s24 = sadd.s32 1, %s951_s21   ;;  %s135_s25 = sadd.s32 1, %s947_s20 }
   0x5   : > { %s132_s26 = ssub.s32 %s951_s21, %s1013_s24  ;;  %p145_p0 = scmp.ne.s32.totalorder %s947_s20, %s943_s19 }
   0x6   : > { %p133_p1 = scmp.eq.s32.totalorder %s132_s26, 0  ;;  %p146_p2 = scmp.eq.s32.totalorder %s1009_s22, 1 }
   0x7   : > { %p151_p3 = scmp.ne.s32.totalorder %s943_s19, %s939_s18  ;;  %p152_p4 = scmp.eq.s32.totalorder %s664_s23, 1 }
   0x8   : > { %s1024_s27 = scalar_select %p133_p1, %s947_s20, %s135_s25  }
   0x9   : > { %p1026_p5 = por %p146_p2, %p145_p0  ;;  %p1030_p6 = por %p152_p4, %p151_p3 }
   0xa   : > { %p667_p7 = scmp.ge.s32.totalorder %s951_s21, 1  ;;  %p191_p8 = scmp.lt.s32.totalorder %s951_s21, 3 }
   0xc   : > { %p192_p9 = pnand %p667_p7, %p191_p8 }
   0xd   : > { %v241_v0 = vld [vmem:[%s1168_s1] sm:$0xff] (!%p192_p9)  ;;  %v242_v1 = vld [vmem:[%s1168_s1 + $0x8] sm:$0xff] (!%p192_p9)  ;;  %s669_s9 = sshll.u32 (!%p192_p9), %s1009_s22, 4  ;;  %vm250_vm0 = vcmask (!%p192_p9), 130048   ;;  %v953_v19 = vmov (!%p192_p9), 0.0|0.0   ;;  %vm954_vm1 = vmmov (!%p192_p9), 0  }
   0xe   : > { %195 = sbr.rel (%p192_p9) target bundleno = 547 (0x223), region = 40  ;;  %v807_v2 = vpack.c.bf16 (!%p192_p9), %v242_v1, %v241_v0  ;;  %p220_p10 = scmp.lt.s32.totalorder (!%p192_p9), %s669_s9, 31  ;;  %811 = vmatprep.subr.bf16.mxu1 (!%p192_p9), %v953_v19  ;;  %v955_v20 = vmov (!%p192_p9), 0.0   ;;  %v461_v21 = vld [vmem:[%s1171_s4] sm:$0xff] (!%p192_p9)  ;;  %v956_v22 = vmov (!%p192_p9), 0   ;;  %vm467_vm2 = vcmask (!%p192_p9), 261120  }
   0xf   : > { %804 = vmatprep.mubr.msk.f32.mxu1 (!%p192_p9), %vm954_vm1, %v955_v20  ;;  %886 = vset.pattern.permute.xlu0 (!%p192_p9), %v956_v22  ;;  %v671_v23 = vld [vmem:[%s1169_s2] ss:$0 sm:$0xff] (!%p192_p9)  ;;  %vm1089_vm3 = vmpackc.low (!%p192_p9), %vm467_vm2, %vm467_vm2  ;;  %s216_s26 = sand.u32 (!%p192_p9), 1, %s943_s19   ;;  %s706_s6 = sshll.u32 (!%p192_p9), %s1009_s22, 7 }
  0x10   : > { %808 = vmatprep.subr.bf16.mxu0 (!%p192_p9), %v807_v2  ;;  %464 = vperm.xlu0 (!%p192_p9), %886, %v461_v21   ;;  %s668_s30 = sshll.u32 (!%p192_p9), %s216_s26, 3  ;;  %s1125_s11 = scalar_lea.hbm (!%p192_p9), %s1172_s5, %s706_s6 }
  0x11   : > { %810 = vmatpush3.bf16.msra.mxu0 (!%p192_p9), %v807_v2  ;;  %s218_s7 = scalar_lea.vmem (!%p192_p9), [#allocation2], %s668_s30  ;;  %s592_s12 = scalar_lea.sflag (!%p192_p9), [#allocation3], %s216_s26 }
  0x12   : > { %s605_s8 = sshll.u32 (!%p192_p9), %s218_s7, 4  ;;  %s957_s22 = smov (!%p192_p9), [#allocation2]   ;;  %s1127_s8 = int_to_ptr.vmem [resolvable:$true] %s605_s8 }
  0x13   : > { %s893_s14 = sshll.u32 (!%p192_p9), %s957_s22, 4  ;;  %s894_s14 = int_to_ptr.vmem [resolvable:$false] %s893_s14 }
  0x14   : > { %s895_s15 = scalar_lea.vmem (!%p192_p9), %s894_s14, 256  ;;  %p896_p0 = scmp.lt.s32.totalorder (!%p192_p9), %s1127_s8, %s894_s14 }
  0x15   : > { %s1182_s9 = smov (!%p220_p10, %s669_s9), 31 }
  0x16   : > { %s670_s10 = sshll.u32 %s1182_s9, 3 }
  0x17   : > { %s1046_s13 = scalar_lea.vmem %s1167_s0, %s670_s10 }
  0x18   : > { %v225_v3 = vld [vmem:[%s1046_s13] sm:$0xff]  ;;  %v226_v4 = vld [vmem:[%s1046_s13 + $0x8] sm:$0xff]  ;;  %v227_v5 = vld [vmem:[%s1046_s13 + $0x10] sm:$0xff] }
  0x19   : > { %748 = vmatprep.mubr.msk.f32.mxu0 %vm250_vm0, %v225_v3  ;;  %v228_v6 = vld [vmem:[%s1046_s13 + $0x18] sm:$0xff]  ;;  %v229_v7 = vld [vmem:[%s1046_s13 + $0x20] sm:$0xff]  ;;  %v230_v8 = vld [vmem:[%s1046_s13 + $0x28] sm:$0xff] }
  0x1a   : > { %749 = vmatmul.mubr.msk.f32.vlgmr.msra.gmra.mrb[0].mxu0 %vm250_vm0, %v226_v4  ;;  %v231_v9 = vld [vmem:[%s1046_s13 + $0x30] sm:$0xff]  ;;  %v232_v10 = vld [vmem:[%s1046_s13 + $0x38] sm:$0xff]  ;;  %v233_v11 = vld [vmem:[%s1046_s13 + $0x40] sm:$0xff] }
  0x1b   : > { %751 = vmatprep.mubr.msk.f32.mxu0 %vm250_vm0, %v227_v5  ;;  %v234_v12 = vld [vmem:[%s1046_s13 + $0x48] sm:$0xff]  ;;  %v235_v13 = vld [vmem:[%s1046_s13 + $0x50] sm:$0xff]  ;;  %v236_v14 = vld [vmem:[%s1046_s13 + $0x58] sm:$0xff] }
  0x1c   : > { %v237_v15 = vld [vmem:[%s1046_s13 + $0x60] sm:$0xff]  ;;  %v238_v16 = vld [vmem:[%s1046_s13 + $0x68] sm:$0xff]  ;;  %v239_v17 = vld [vmem:[%s1046_s13 + $0x70] sm:$0xff] }
  0x1d   : > { %v240_v18 = vld [vmem:[%s1046_s13 + $0x78] sm:$0xff]  ;;  %s889_s13 = scalar_lea.vmem %s1127_s8, 128 }
  0x1e   : > { %752 = vmatmul.mubr.msk.f32.gmra.mrb[2].mxu0 %vm250_vm0, %v228_v6  ;;  %p890_p11 = scmp.ne.s32.totalorder %s1127_s8, %s889_s13  ;;  %p897_p1 = scmp.lt.s32.totalorder %s895_s15, %s889_s13 }
  0x1f   : > { %754 = vmatprep.mubr.msk.f32.mxu0 %vm250_vm0, %v229_v7 }
  0x20   : > { %p891_p12 = pnand %p890_p11, %p1026_p5  ;;  %p898_p2 = por %p897_p1, %p896_p0 }
  0x22   : > { %755 = vmatmul.mubr.msk.f32.gmra.mrb[4].mxu0 %vm250_vm0, %v230_v8  ;;  %p892_p13 = pneg %p891_p12 }
  0x23   : > { %757 = vmatprep.mubr.msk.f32.mxu0 %vm250_vm0, %v231_v9 }
  0x24   : > { %p899_p3 = pnand %p898_p2, %p892_p13 }
  0x26   : > { %758 = vmatmul.mubr.msk.f32.gmra.mrb[6].mxu0 %vm250_vm0, %v232_v10 }
  0x27   : > { %760 = vmatprep.mubr.msk.f32.mxu0 %vm250_vm0, %v233_v11 }
  0x2a   : > { %761 = vmatmul.mubr.msk.f32.gmra.mrb[8].mxu0 %vm250_vm0, %v234_v12 }
  0x2b   : > { %763 = vmatprep.mubr.msk.f32.mxu0 %vm250_vm0, %v235_v13 }
  0x2e   : > { %764 = vmatmul.mubr.msk.f32.gmra.mrb[10].mxu0 %vm250_vm0, %v236_v14 }
  0x2f   : > { %766 = vmatprep.mubr.msk.f32.mxu0 %vm250_vm0, %v237_v15 }
  0x32   : > { %767 = vmatmul.mubr.msk.f32.gmra.mrb[12].mxu0 %vm250_vm0, %v238_v16 }
  0x33   : > { %769 = vmatprep.mubr.msk.f32.mxu0 %vm250_vm0, %v239_v17  ;;  %v460_v17 = vld [vmem:[%s1170_s3] sm:$0xff] }
  0x36   : > { %770 = vmatmul.mubr.msk.f32.gmra.mrb[14].mxu0 %vm250_vm0, %v240_v18 }
  0x8f   : > { %v465_v18 = vpop.permute.xlu0 %464 }
  0xed   : > { %v750_v24 = vpop.f32.mrb[0].mxu0 }
  0xee   : > { %v371_v25 = vadd.f32 %v750_v24, %v671_v23  ;;  %v365_v26 = vpop.f32.mrb[1].mxu0 }
  0xef   : > { %v366_v27 = vadd.f32 %v671_v23, %v365_v26 }
  0xf0   : > { %v445_v28 = vmax.f32 %v371_v25, 0.0 }
  0xf1   : > { %v444_v29 = vmax.f32 %v366_v27, 0.0  ;;  %v753_v30 = vpop.f32.mrb[2].mxu0 }
  0xf2   : > { %v381_v31 = vadd.f32 %v753_v30, %v671_v23  ;;  %v375_v32 = vpop.f32.mrb[3].mxu0 }
  0xf3   : > { %v812_v34 = vpack.c.bf16 %v445_v28, %v444_v29  ;;  %v376_v35 = vadd.f32 %v671_v23, %v375_v32 }
  0xf4   : > { %v447_v36 = vmax.f32 %v381_v31, 0.0 }
  0xf5   : > { %v446_v37 = vmax.f32 %v376_v35, 0.0  ;;  %814 = vmatpush3.bf16.xpose.msk.msra.mxu1 %vm1089_vm3, %v812_v34  ;;  %v756_v38 = vpop.f32.mrb[4].mxu0 }
  0xf6   : > { %v391_v39 = vadd.f32 %v756_v38, %v671_v23  ;;  %815 = vmatprep.subr.bf16.mxu1 %v953_v19  ;;  %v385_v40 = vpop.f32.mrb[5].mxu0 }
  0xf7   : > { %v816_v41 = vpack.c.bf16 %v447_v36, %v446_v37  ;;  %v386_v42 = vadd.f32 %v671_v23, %v385_v40 }
  0xf8   : > { %v449_v43 = vmax.f32 %v391_v39, 0.0 }
  0xf9   : > { %v448_v44 = vmax.f32 %v386_v42, 0.0  ;;  %v759_v45 = vpop.f32.mrb[6].mxu0 }
  0xfa   : > { %v401_v46 = vadd.f32 %v759_v45, %v671_v23  ;;  %v395_v47 = vpop.f32.mrb[7].mxu0 }
  0xfb   : > { %v820_v48 = vpack.c.bf16 %v449_v43, %v448_v44  ;;  %v396_v49 = vadd.f32 %v671_v23, %v395_v47 }
  0xfc   : > { %v451_v50 = vmax.f32 %v401_v46, 0.0 }
  0xfd   : > { %818 = vmatpush3.bf16.xpose.msk.msra.mxu1 %vm1089_vm3, %v816_v41  ;;  %v450_v51 = vmax.f32 %v396_v49, 0.0  ;;  %v762_v52 = vpop.f32.mrb[8].mxu0 }
  0xfe   : > { %819 = vmatprep.subr.bf16.mxu1 %v953_v19  ;;  %v411_v53 = vadd.f32 %v762_v52, %v671_v23  ;;  %v405_v54 = vpop.f32.mrb[9].mxu0 }
  0xff   : > { %v824_v55 = vpack.c.bf16 %v451_v50, %v450_v51  ;;  %v406_v56 = vadd.f32 %v671_v23, %v405_v54 }
 0x100   : > { %v453_v57 = vmax.f32 %v411_v53, 0.0 }
 0x101   : > { %v452_v58 = vmax.f32 %v406_v56, 0.0  ;;  %v765_v59 = vpop.f32.mrb[10].mxu0 }
 0x102   : > { %v421_v60 = vadd.f32 %v765_v59, %v671_v23  ;;  %v415_v61 = vpop.f32.mrb[11].mxu0 }
 0x103   : > { %v828_v62 = vpack.c.bf16 %v453_v57, %v452_v58  ;;  %v416_v63 = vadd.f32 %v671_v23, %v415_v61 }
 0x104   : > { %v455_v0 = vmax.f32 %v421_v60, 0.0 }
 0x105   : > { %822 = vmatpush3.bf16.xpose.msk.msra.mxu1 %vm1089_vm3, %v820_v48  ;;  %v454_v1 = vmax.f32 %v416_v63, 0.0  ;;  %v768_v2 = vpop.f32.mrb[12].mxu0 }
 0x106   : > { %823 = vmatprep.subr.bf16.mxu1 %v953_v19  ;;  %v431_v3 = vadd.f32 %v768_v2, %v671_v23  ;;  %v425_v4 = vpop.f32.mrb[13].mxu0 }
 0x107   : > { %v832_v5 = vpack.c.bf16 %v455_v0, %v454_v1  ;;  %v426_v6 = vadd.f32 %v671_v23, %v425_v4 }
 0x108   : > { %v457_v7 = vmax.f32 %v431_v3, 0.0 }
 0x109   : > { %v456_v8 = vmax.f32 %v426_v6, 0.0  ;;  %v771_v9 = vpop.f32.mrb[14].mxu0 }
 0x10a   : > { %v441_v10 = vadd.f32 %v771_v9, %v671_v23  ;;  %v435_v11 = vpop.f32.mrb[15].mxu0 }
 0x10b   : > { %v836_v12 = vpack.c.bf16 %v457_v7, %v456_v8  ;;  %v436_v13 = vadd.f32 %v671_v23, %v435_v11 }
 0x10c   : > { %v459_v14 = vmax.f32 %v441_v10, 0.0 }
 0x10d   : > { %826 = vmatpush3.bf16.xpose.msk.msra.mxu1 %vm1089_vm3, %v824_v55  ;;  %v458_v15 = vmax.f32 %v436_v13, 0.0 }
 0x10e   : > { %827 = vmatprep.subr.bf16.mxu1 %v953_v19 }
 0x10f   : > { %v840_v16 = vpack.c.bf16 %v459_v14, %v458_v15 }
 0x115   : > { %830 = vmatpush3.bf16.xpose.msk.msra.mxu1 %vm1089_vm3, %v828_v62 }
 0x116   : > { %831 = vmatprep.subr.bf16.mxu1 %v953_v19 }
 0x11d   : > { %834 = vmatpush3.bf16.xpose.msk.msra.mxu1 %vm1089_vm3, %v832_v5 }
 0x11e   : > { %835 = vmatprep.subr.bf16.mxu1 %v953_v19 }
 0x125   : > { %838 = vmatpush3.bf16.xpose.msk.msra.mxu1 %vm1089_vm3, %v836_v12 }
 0x126   : > { %839 = vmatprep.subr.bf16.mxu1 %v953_v19 }
 0x12d   : > { %842 = vmatpush3.bf16.xpose.msk.msra.mxu1 %vm1089_vm3, %v840_v16 }
 0x134   : > { %805 = vmatmul.mubr.msk.f32.vlgmr.msra.gmra.mrb[0].mxu1 %vm467_vm2, %v460_v17 }
 0x207   : > { %v585_v20 = vpop.f32.mrb[0].mxu1 }
 0x208   : > { %v586_v21 = vadd.f32 %v585_v20, %v465_v18  ;;  %v806_v22 = vpop.f32.mrb[1].mxu1 }
 0x20a   : > { %887 = vtanh.f32 %v586_v21 }
 0x214   : > { %v888_v19 = vpop.eup %887 }
 0x215   : > { %590 = vst [vmem:[%s218_s7] sm:$0xff] %v888_v19 }
 0x216   : > { %902 = shalt.err (!%p899_p3)
}
 0x217   : > { %s903_s16 = scalar_lea.hbm %s1125_s11, 128  ;;  %s907_s25 = scalar_lea.hbm %s1172_s5, 256 }
 0x218   : > { %p904_p4 = scmp.ne.s32.totalorder %s1125_s11, %s903_s16  ;;  %p908_p9 = scmp.lt.u32.totalorder %s1125_s11, %s1172_s5 }
 0x219   : > { %p909_p10 = scmp.lt.u32.totalorder %s907_s25, %s903_s16  ;;  %p911_p12 = scmp.lt.u32.totalorder %s903_s16, %s1125_s11 }
 0x21a   : > { %p905_p7 = pnand %p904_p4, %p1026_p5 }
 0x21b   : > { %p910_p11 = por %p909_p10, %p908_p9 }
 0x21c   : > { %p906_p8 = pneg %p905_p7 }
 0x21d   : > { %p912_p13 = por %p911_p12, %p910_p11 }
 0x21f   : > { %p913_p0 = pnand %p912_p13, %p906_p8 }
 0x221   : > { %916 = shalt.err (!%p913_p0)
}
 0x222   : > { %843 = dma.vmem_to_hbm [thread:$0]  (%p1026_p5), %s1127_s8, 128, %s1125_s11, %s592_s12  }
 0x223 PF: > { %p849_p1 = scmp.ge.s32.totalorder %s951_s21, 2  ;;  %s617_s6 = sand.u32 1, %s939_s18  }
 0x224   : > { %s618_s7 = scalar_lea.sflag [#allocation3], %s617_s6 }
 0x225   : > { %p846_p2 = pnand %p849_p1, %p1030_p6 }
 0x227   : > { %934 = dma.done.wait (!%p846_p2), %s618_s7, 128  }
 0x228   : > { %936 = vsyncadd (!%p846_p2), %s618_s7, 4294967168  ;;  %p15_p3 = scmp.ge.s32.totalorder %s1013_s24, 4   ;;  %s1177_s18 = smov %s943_s19 }
 0x229   : > { %s1178_s19 = smov %s947_s20  ;;  %s1179_s20 = smov %s1024_s27 }
 0x22a   : > { %s1180_s21 = smov %s1013_s24  ;;  %17 = sbr.rel (!%p15_p3) target bundleno = 3 (0x3), region = 75 }
 0x231   :  { %623 = vsyncpa [#allocation3], 1 }
 0x232   :  { %625 = vsyncpa [#allocation3 + $0x1], 1 }

</bundles_post_ra>
